<compile_context>
chip_gen: v5e
topology: v5e:2x2
jax: 0.10.0
libtpu: 0.0.40
codegen_flags: <defaults>
</compile_context>

<pallas_src>
import math

import jax
import jax.numpy as jnp
from jax.experimental import pallas as pl
from jax.experimental.pallas import tpu as pltpu


# ----------------------------------------------------------------------------
# Pallas kernel: the entire BaselineFC forward (embedding pre-folded into fc0)
# ----------------------------------------------------------------------------
def baseline_fc_kernel(mark_ref, x_ref, wx_ref, hw_ref, b0f_ref,
                       w1t_ref, b1_ref, wot_ref, bo_ref, out_ref):
    """Fused (folded-embedding + fc0) + fc1 + out_layer.

    mark_ref : SMEM [B, L] int32   hour-of-day (0..23)
    x_ref    : VMEM [B, L*C]       raw inputs, flattened row-major
    wx_ref   : VMEM [L*C, D]       conv taps ∘ fc0, fully folded
    hw_ref   : VMEM [24, L, D]     hour table ∘ fc0:  hw[t, l] = htab[t] @ W0_l
    b0f_ref  : VMEM [1, D]         fc0 bias + positional embedding ∘ fc0
    w1t_ref  : VMEM [D, D]         fc1 weight (pre-transposed)
    b1_ref   : VMEM [1, D]
    wot_ref  : VMEM [D, P]         out_layer weight (pre-transposed)
    bo_ref   : VMEM [1, P]
    out_ref  : VMEM [B, P]
    """
    B, L = mark_ref.shape
    D = w1t_ref.shape[0]
    hp = jax.lax.Precision.HIGHEST

    # ---- fc0 over the flattened embedding (token-conv + pos-emb folded in):
    #      ONE MXU op instead of 1 embedding matmul + 8 unrolled fc0 dots.
    h = jnp.dot(x_ref[...], wx_ref[...], precision=hp,
                preferred_element_type=jnp.float32) + b0f_ref[...]        # [B, D]

    # ---- hour-of-day embedding folded through fc0:
    #      h[b] += sum_l hw[mark[b, l], l, :]
    #      B*L = 16 static [1, D] row gathers (dynamic index only on the leading
    #      dim of hw — each hw[t] slab is exactly one (8,128) tile), no MXU use.
    rows = []
    for b in range(B):
        r = jnp.zeros((1, D), jnp.float32)
        for l in range(L):
            t = mark_ref[b, l]                    # SMEM scalar read
            r = r + hw_ref[t, pl.ds(l, 1), :]     # [1, D]
        rows.append(r)
    h = h + jnp.concatenate(rows, axis=0)                                  # [B, D]

    # ---- fc1: Linear(D -> D)  (the module has no nonlinearity between fcs)
    h = jnp.dot(h, w1t_ref[...], precision=hp,
                preferred_element_type=jnp.float32) + b1_ref[...]          # [B, D]

    # ---- dropout (identity, eval) + out_layer: Linear(D -> P)
    out_ref[...] = (jnp.dot(h, wot_ref[...], precision=hp,
                            preferred_element_type=jnp.float32)
                    + bo_ref[...]).astype(out_ref.dtype)                   # [B, P]


# ----------------------------------------------------------------------------
# Wrapper: one pallas_call, everything resident, no grid / no tiling
# ----------------------------------------------------------------------------
def baseline_fc_forward(inputs, input_mark, kparams):
    """inputs: [B, L, C] float32; input_mark: [B, L] int32 hour-of-day (0..23)."""
    B, L, C = inputs.shape
    P = kparams["wot"].shape[1]

    x_flat = inputs.reshape(B, L * C)     # row-major flatten; only non-kernel op

    vmem = pl.BlockSpec(memory_space=pltpu.MemorySpace.VMEM)
    smem = pl.BlockSpec(memory_space=pltpu.MemorySpace.SMEM)

    return pl.pallas_call(
        baseline_fc_kernel,
        out_shape=jax.ShapeDtypeStruct((B, P), jnp.float32),
        in_specs=[smem, vmem, vmem, vmem, vmem, vmem, vmem, vmem, vmem],
        out_specs=vmem,
    )(input_mark, x_flat, kparams["wx"], kparams["hw"], kparams["b0f"],
      kparams["w1t"], kparams["b1"], kparams["wot"], kparams["bo"])


# ----------------------------------------------------------------------------
# Parameters (module-style) and the one-time weight fold
# ----------------------------------------------------------------------------
def _sinusoidal_pe(L, E):
    pos = jnp.arange(L, dtype=jnp.float32)[:, None]
    div = jnp.exp(jnp.arange(0, E, 2, dtype=jnp.float32)
                  * (-math.log(10000.0) / E))
    pe = jnp.zeros((L, E), jnp.float32)
    pe = pe.at[:, 0::2].set(jnp.sin(pos * div))
    pe = pe.at[:, 1::2].set(jnp.cos(pos * div))
    return pe


def init_params(key, *, emb_in, seq_len, emb_len, d_model, pred_len):
    ks = iter(jax.random.split(key, 8))

    def nrm(shape, scale):
        return scale * jax.random.normal(next(ks), shape, dtype=jnp.float32)

    C, L, E, D, P = emb_in, seq_len, emb_len, d_model, pred_len
    # TokenEmbedding conv weight: 3 taps (ordered [l-1; l; l+1]), each [C, E],
    # stacked with the 24-entry hour embedding table along the contraction axis.
    wc = nrm((3 * C, E), 0.1)
    htab = nrm((24, E), 0.1)
    return {
        "wstack": jnp.concatenate([wc, htab], axis=0),   # [3C+24, E]
        "pe": _sinusoidal_pe(L, E),                      # [L, E]
        # fc0 weight stored per-timestep: w0r[l, e, d] == W0[d, l*E + e]
        "w0r": nrm((L, E, D), 0.05),
        "b0": nrm((1, D), 0.05),
        "w1t": nrm((D, D), 0.05),                        # fc1 weight, transposed
        "b1": nrm((1, D), 0.05),
        "wot": nrm((D, P), 0.05),                        # out_layer weight, transposed
        "bo": nrm((1, P), 0.05),
    }


def fold_params(params, *, seq_len, emb_in):
    """Fold DataEmbedding into fc0 (do once; re-fold whenever weights change)."""
    L, C = seq_len, emb_in
    hp = jax.lax.Precision.HIGHEST
    wstack = params["wstack"]
    w_m1, w_0, w_p1 = wstack[:C], wstack[C:2 * C], wstack[2 * C:3 * C]
    htab = wstack[3 * C:]                                  # [24, E]
    w0r = params["w0r"]                                    # [L, E, D]
    D = w0r.shape[-1]

    # Circular k=3 conv ∘ fc0:
    #   Wx[l] = W_{l-1-tap} @ W0_{(l+1)%L} + W_{l-tap} @ W0_l + W_{l+1-tap} @ W0_{(l-1)%L}
    wx = (jnp.einsum("ce,led->lcd", w_m1, jnp.roll(w0r, -1, axis=0), precision=hp)
          + jnp.einsum("ce,led->lcd", w_0, w0r, precision=hp)
          + jnp.einsum("ce,led->lcd", w_p1, jnp.roll(w0r, 1, axis=0), precision=hp))
    # Hour embedding ∘ fc0, laid out [24, L, D] so the kernel gather only uses a
    # dynamic index on the leading (untiled) dim.
    hw = jnp.einsum("te,led->tld", htab, w0r, precision=hp)
    # Positional embedding ∘ fc0 folded into the bias.
    b0f = params["b0"] + jnp.einsum("le,led->d", params["pe"], w0r,
                                    precision=hp)[None, :]
    return {
        "wx": wx.reshape(L * C, D),    # [L*C, D]
        "hw": hw,                      # [24, L, D]
        "b0f": b0f,                    # [1, D]
        "w1t": params["w1t"], "b1": params["b1"],
        "wot": params["wot"], "bo": params["bo"],
    }


# ----------------------------------------------------------------------------
# Pure-JAX reference (unfolded math, module layout) for a correctness check
# ----------------------------------------------------------------------------
def baseline_fc_reference(inputs, input_mark, params):
    B, L, C = inputs.shape
    hp = jax.lax.Precision.HIGHEST
    D = params["w0r"].shape[-1]
    hoh = jax.nn.one_hot(input_mark, 24, dtype=inputs.dtype)
    s = jnp.concatenate([jnp.roll(inputs, 1, axis=1), inputs,
                         jnp.roll(inputs, -1, axis=1), hoh], axis=-1)
    emb = jnp.einsum("blk,ke->ble", s, params["wstack"],
                     precision=hp) + params["pe"][None]
    x = emb.reshape(B, -1)
    h = jnp.dot(x, params["w0r"].reshape(-1, D), precision=hp) + params["b0"]
    h = jnp.dot(h, params["w1t"], precision=hp) + params["b1"]
    return jnp.dot(h, params["wot"], precision=hp) + params["bo"]


# ----------------------------------------------------------------------------
if __name__ == "__main__":
    B, L, C = 2, 8, 4            # batch, seq_len, emb_in
    E, D, P = 32, 128, 8         # emb_len, d_model, pred_len

    key = jax.random.PRNGKey(0)
    k_in, k_mark, k_par = jax.random.split(key, 3)
    inputs = jax.random.normal(k_in, (B, L, C), dtype=jnp.float32)
    input_mark = jax.random.randint(k_mark, (B, L), 0, 24, dtype=jnp.int32)

    params = init_params(k_par, emb_in=C, seq_len=L, emb_len=E,
                         d_model=D, pred_len=P)
    kparams = fold_params(params, seq_len=L, emb_in=C)   # one-time weight fold

    fwd = jax.jit(baseline_fc_forward)
    out = jax.block_until_ready(fwd(inputs, input_mark, kparams))

    ref = baseline_fc_reference(inputs, input_mark, params)
    assert out.shape == (B, P)
    assert bool(jnp.all(jnp.isfinite(out)))
    # With precision=HIGHEST on both sides the observed diff is ~1e-6; the
    # tolerance is kept loose enough to absorb a bf16 MXU fallback.
    assert bool(jnp.allclose(out, ref, rtol=5e-3, atol=5e-3)), (
        f"max abs diff {float(jnp.max(jnp.abs(out - ref)))}")
    print("KERNEL_OK")
</pallas_src>

<mosaic_0001>
module attributes {stable_mosaic.version = 11 : i64} {
  func.func @baseline_fc_kernel(%arg0: memref<2x8xi32, #tpu.memory_space<smem>>, %arg1: memref<2x32xf32, #tpu.memory_space<vmem>>, %arg2: memref<32x128xf32, #tpu.memory_space<vmem>>, %arg3: memref<24x8x128xf32, #tpu.memory_space<vmem>>, %arg4: memref<1x128xf32, #tpu.memory_space<vmem>>, %arg5: memref<128x128xf32, #tpu.memory_space<vmem>>, %arg6: memref<1x128xf32, #tpu.memory_space<vmem>>, %arg7: memref<128x8xf32, #tpu.memory_space<vmem>>, %arg8: memref<1x8xf32, #tpu.memory_space<vmem>>, %arg9: memref<2x8xf32, #tpu.memory_space<vmem>>) attributes {dimension_semantics = [], scalar_prefetch = 0 : i64, scratch_operands = 0 : i64, tpu.core_type = #tpu.core_type<tc>} {
    %c0 = arith.constant 0 : index
    %c0_0 = arith.constant 0 : index
    %0 = vector.load %arg1[%c0, %c0_0] : memref<2x32xf32, #tpu.memory_space<vmem>>, vector<2x32xf32>
    %c0_1 = arith.constant 0 : index
    %c0_2 = arith.constant 0 : index
    %1 = vector.load %arg2[%c0_1, %c0_2] : memref<32x128xf32, #tpu.memory_space<vmem>>, vector<32x128xf32>
    %cst = arith.constant dense<0.000000e+00> : vector<2x128xf32>
    %2 = tpu.matmul %0, %1, %cst {dimension_numbers = #tpu.dot_dimension_numbers<[1], [0], [0], [1], [0, 0, 1, 1], [], []>, precision = #tpu.contract_precision<fp32>} : vector<2x32xf32>, vector<32x128xf32>, vector<2x128xf32> -> vector<2x128xf32>
    %c0_3 = arith.constant 0 : index
    %c0_4 = arith.constant 0 : index
    %3 = vector.load %arg4[%c0_3, %c0_4] : memref<1x128xf32, #tpu.memory_space<vmem>>, vector<1x128xf32>
    %4 = vector.broadcast %3 : vector<1x128xf32> to vector<2x128xf32>
    %5 = arith.addf %2, %4 : vector<2x128xf32>
    %cst_5 = arith.constant 0.000000e+00 : f32
    %6 = vector.broadcast %cst_5 : f32 to vector<1x128xf32>
    %c0_6 = arith.constant 0 : index
    %c0_7 = arith.constant 0 : index
    %7 = memref.load %arg0[%c0_6, %c0_7] : memref<2x8xi32, #tpu.memory_space<smem>>
    %8 = arith.index_cast %7 : i32 to index
    %c0_8 = arith.constant 0 : index
    %c0_9 = arith.constant 0 : index
    %9 = vector.load %arg3[%8, %c0_8, %c0_9] : memref<24x8x128xf32, #tpu.memory_space<vmem>>, vector<1x1x128xf32>
    %10 = vector.shape_cast %9 : vector<1x1x128xf32> to vector<1x128xf32>
    %11 = arith.addf %6, %10 : vector<1x128xf32>
    %c0_10 = arith.constant 0 : index
    %c1 = arith.constant 1 : index
    %12 = memref.load %arg0[%c0_10, %c1] : memref<2x8xi32, #tpu.memory_space<smem>>
    %13 = arith.index_cast %12 : i32 to index
    %c1_11 = arith.constant 1 : index
    %c0_12 = arith.constant 0 : index
    %14 = vector.load %arg3[%13, %c1_11, %c0_12] : memref<24x8x128xf32, #tpu.memory_space<vmem>>, vector<1x1x128xf32>
    %15 = vector.shape_cast %14 : vector<1x1x128xf32> to vector<1x128xf32>
    %16 = arith.addf %11, %15 : vector<1x128xf32>
    %c0_13 = arith.constant 0 : index
    %c2 = arith.constant 2 : index
    %17 = memref.load %arg0[%c0_13, %c2] : memref<2x8xi32, #tpu.memory_space<smem>>
    %18 = arith.index_cast %17 : i32 to index
    %c2_14 = arith.constant 2 : index
    %c0_15 = arith.constant 0 : index
    %19 = vector.load %arg3[%18, %c2_14, %c0_15] : memref<24x8x128xf32, #tpu.memory_space<vmem>>, vector<1x1x128xf32>
    %20 = vector.shape_cast %19 : vector<1x1x128xf32> to vector<1x128xf32>
    %21 = arith.addf %16, %20 : vector<1x128xf32>
    %c0_16 = arith.constant 0 : index
    %c3 = arith.constant 3 : index
    %22 = memref.load %arg0[%c0_16, %c3] : memref<2x8xi32, #tpu.memory_space<smem>>
    %23 = arith.index_cast %22 : i32 to index
    %c3_17 = arith.constant 3 : index
    %c0_18 = arith.constant 0 : index
    %24 = vector.load %arg3[%23, %c3_17, %c0_18] : memref<24x8x128xf32, #tpu.memory_space<vmem>>, vector<1x1x128xf32>
    %25 = vector.shape_cast %24 : vector<1x1x128xf32> to vector<1x128xf32>
    %26 = arith.addf %21, %25 : vector<1x128xf32>
    %c0_19 = arith.constant 0 : index
    %c4 = arith.constant 4 : index
    %27 = memref.load %arg0[%c0_19, %c4] : memref<2x8xi32, #tpu.memory_space<smem>>
    %28 = arith.index_cast %27 : i32 to index
    %c4_20 = arith.constant 4 : index
    %c0_21 = arith.constant 0 : index
    %29 = vector.load %arg3[%28, %c4_20, %c0_21] : memref<24x8x128xf32, #tpu.memory_space<vmem>>, vector<1x1x128xf32>
    %30 = vector.shape_cast %29 : vector<1x1x128xf32> to vector<1x128xf32>
    %31 = arith.addf %26, %30 : vector<1x128xf32>
    %c0_22 = arith.constant 0 : index
    %c5 = arith.constant 5 : index
    %32 = memref.load %arg0[%c0_22, %c5] : memref<2x8xi32, #tpu.memory_space<smem>>
    %33 = arith.index_cast %32 : i32 to index
    %c5_23 = arith.constant 5 : index
    %c0_24 = arith.constant 0 : index
    %34 = vector.load %arg3[%33, %c5_23, %c0_24] : memref<24x8x128xf32, #tpu.memory_space<vmem>>, vector<1x1x128xf32>
    %35 = vector.shape_cast %34 : vector<1x1x128xf32> to vector<1x128xf32>
    %36 = arith.addf %31, %35 : vector<1x128xf32>
    %c0_25 = arith.constant 0 : index
    %c6 = arith.constant 6 : index
    %37 = memref.load %arg0[%c0_25, %c6] : memref<2x8xi32, #tpu.memory_space<smem>>
    %38 = arith.index_cast %37 : i32 to index
    %c6_26 = arith.constant 6 : index
    %c0_27 = arith.constant 0 : index
    %39 = vector.load %arg3[%38, %c6_26, %c0_27] : memref<24x8x128xf32, #tpu.memory_space<vmem>>, vector<1x1x128xf32>
    %40 = vector.shape_cast %39 : vector<1x1x128xf32> to vector<1x128xf32>
    %41 = arith.addf %36, %40 : vector<1x128xf32>
    %c0_28 = arith.constant 0 : index
    %c7 = arith.constant 7 : index
    %42 = memref.load %arg0[%c0_28, %c7] : memref<2x8xi32, #tpu.memory_space<smem>>
    %43 = arith.index_cast %42 : i32 to index
    %c7_29 = arith.constant 7 : index
    %c0_30 = arith.constant 0 : index
    %44 = vector.load %arg3[%43, %c7_29, %c0_30] : memref<24x8x128xf32, #tpu.memory_space<vmem>>, vector<1x1x128xf32>
    %45 = vector.shape_cast %44 : vector<1x1x128xf32> to vector<1x128xf32>
    %46 = arith.addf %41, %45 : vector<1x128xf32>
    %cst_31 = arith.constant 0.000000e+00 : f32
    %47 = vector.broadcast %cst_31 : f32 to vector<1x128xf32>
    %c1_32 = arith.constant 1 : index
    %c0_33 = arith.constant 0 : index
    %48 = memref.load %arg0[%c1_32, %c0_33] : memref<2x8xi32, #tpu.memory_space<smem>>
    %49 = arith.index_cast %48 : i32 to index
    %c0_34 = arith.constant 0 : index
    %c0_35 = arith.constant 0 : index
    %50 = vector.load %arg3[%49, %c0_34, %c0_35] : memref<24x8x128xf32, #tpu.memory_space<vmem>>, vector<1x1x128xf32>
    %51 = vector.shape_cast %50 : vector<1x1x128xf32> to vector<1x128xf32>
    %52 = arith.addf %47, %51 : vector<1x128xf32>
    %c1_36 = arith.constant 1 : index
    %c1_37 = arith.constant 1 : index
    %53 = memref.load %arg0[%c1_36, %c1_37] : memref<2x8xi32, #tpu.memory_space<smem>>
    %54 = arith.index_cast %53 : i32 to index
    %c1_38 = arith.constant 1 : index
    %c0_39 = arith.constant 0 : index
    %55 = vector.load %arg3[%54, %c1_38, %c0_39] : memref<24x8x128xf32, #tpu.memory_space<vmem>>, vector<1x1x128xf32>
    %56 = vector.shape_cast %55 : vector<1x1x128xf32> to vector<1x128xf32>
    %57 = arith.addf %52, %56 : vector<1x128xf32>
    %c1_40 = arith.constant 1 : index
    %c2_41 = arith.constant 2 : index
    %58 = memref.load %arg0[%c1_40, %c2_41] : memref<2x8xi32, #tpu.memory_space<smem>>
    %59 = arith.index_cast %58 : i32 to index
    %c2_42 = arith.constant 2 : index
    %c0_43 = arith.constant 0 : index
    %60 = vector.load %arg3[%59, %c2_42, %c0_43] : memref<24x8x128xf32, #tpu.memory_space<vmem>>, vector<1x1x128xf32>
    %61 = vector.shape_cast %60 : vector<1x1x128xf32> to vector<1x128xf32>
    %62 = arith.addf %57, %61 : vector<1x128xf32>
    %c1_44 = arith.constant 1 : index
    %c3_45 = arith.constant 3 : index
    %63 = memref.load %arg0[%c1_44, %c3_45] : memref<2x8xi32, #tpu.memory_space<smem>>
    %64 = arith.index_cast %63 : i32 to index
    %c3_46 = arith.constant 3 : index
    %c0_47 = arith.constant 0 : index
    %65 = vector.load %arg3[%64, %c3_46, %c0_47] : memref<24x8x128xf32, #tpu.memory_space<vmem>>, vector<1x1x128xf32>
    %66 = vector.shape_cast %65 : vector<1x1x128xf32> to vector<1x128xf32>
    %67 = arith.addf %62, %66 : vector<1x128xf32>
    %c1_48 = arith.constant 1 : index
    %c4_49 = arith.constant 4 : index
    %68 = memref.load %arg0[%c1_48, %c4_49] : memref<2x8xi32, #tpu.memory_space<smem>>
    %69 = arith.index_cast %68 : i32 to index
    %c4_50 = arith.constant 4 : index
    %c0_51 = arith.constant 0 : index
    %70 = vector.load %arg3[%69, %c4_50, %c0_51] : memref<24x8x128xf32, #tpu.memory_space<vmem>>, vector<1x1x128xf32>
    %71 = vector.shape_cast %70 : vector<1x1x128xf32> to vector<1x128xf32>
    %72 = arith.addf %67, %71 : vector<1x128xf32>
    %c1_52 = arith.constant 1 : index
    %c5_53 = arith.constant 5 : index
    %73 = memref.load %arg0[%c1_52, %c5_53] : memref<2x8xi32, #tpu.memory_space<smem>>
    %74 = arith.index_cast %73 : i32 to index
    %c5_54 = arith.constant 5 : index
    %c0_55 = arith.constant 0 : index
    %75 = vector.load %arg3[%74, %c5_54, %c0_55] : memref<24x8x128xf32, #tpu.memory_space<vmem>>, vector<1x1x128xf32>
    %76 = vector.shape_cast %75 : vector<1x1x128xf32> to vector<1x128xf32>
    %77 = arith.addf %72, %76 : vector<1x128xf32>
    %c1_56 = arith.constant 1 : index
    %c6_57 = arith.constant 6 : index
    %78 = memref.load %arg0[%c1_56, %c6_57] : memref<2x8xi32, #tpu.memory_space<smem>>
    %79 = arith.index_cast %78 : i32 to index
    %c6_58 = arith.constant 6 : index
    %c0_59 = arith.constant 0 : index
    %80 = vector.load %arg3[%79, %c6_58, %c0_59] : memref<24x8x128xf32, #tpu.memory_space<vmem>>, vector<1x1x128xf32>
    %81 = vector.shape_cast %80 : vector<1x1x128xf32> to vector<1x128xf32>
    %82 = arith.addf %77, %81 : vector<1x128xf32>
    %c1_60 = arith.constant 1 : index
    %c7_61 = arith.constant 7 : index
    %83 = memref.load %arg0[%c1_60, %c7_61] : memref<2x8xi32, #tpu.memory_space<smem>>
    %84 = arith.index_cast %83 : i32 to index
    %c7_62 = arith.constant 7 : index
    %c0_63 = arith.constant 0 : index
    %85 = vector.load %arg3[%84, %c7_62, %c0_63] : memref<24x8x128xf32, #tpu.memory_space<vmem>>, vector<1x1x128xf32>
    %86 = vector.shape_cast %85 : vector<1x1x128xf32> to vector<1x128xf32>
    %87 = arith.addf %82, %86 : vector<1x128xf32>
    %88 = tpu.concatenate %46, %87 in 0 : vector<1x128xf32>, vector<1x128xf32> -> vector<2x128xf32>
    %89 = arith.addf %5, %88 : vector<2x128xf32>
    %c0_64 = arith.constant 0 : index
    %c0_65 = arith.constant 0 : index
    %90 = vector.load %arg5[%c0_64, %c0_65] : memref<128x128xf32, #tpu.memory_space<vmem>>, vector<128x128xf32>
    %cst_66 = arith.constant dense<0.000000e+00> : vector<2x128xf32>
    %91 = tpu.matmul %89, %90, %cst_66 {dimension_numbers = #tpu.dot_dimension_numbers<[1], [0], [0], [1], [0, 0, 1, 1], [], []>, precision = #tpu.contract_precision<fp32>} : vector<2x128xf32>, vector<128x128xf32>, vector<2x128xf32> -> vector<2x128xf32>
    %c0_67 = arith.constant 0 : index
    %c0_68 = arith.constant 0 : index
    %92 = vector.load %arg6[%c0_67, %c0_68] : memref<1x128xf32, #tpu.memory_space<vmem>>, vector<1x128xf32>
    %93 = vector.broadcast %92 : vector<1x128xf32> to vector<2x128xf32>
    %94 = arith.addf %91, %93 : vector<2x128xf32>
    %c0_69 = arith.constant 0 : index
    %c0_70 = arith.constant 0 : index
    %95 = vector.load %arg7[%c0_69, %c0_70] : memref<128x8xf32, #tpu.memory_space<vmem>>, vector<128x8xf32>
    %cst_71 = arith.constant dense<0.000000e+00> : vector<2x8xf32>
    %96 = tpu.matmul %94, %95, %cst_71 {dimension_numbers = #tpu.dot_dimension_numbers<[1], [0], [0], [1], [0, 0, 1, 1], [], []>, precision = #tpu.contract_precision<fp32>} : vector<2x128xf32>, vector<128x8xf32>, vector<2x8xf32> -> vector<2x8xf32>
    %c0_72 = arith.constant 0 : index
    %c0_73 = arith.constant 0 : index
    %97 = vector.load %arg8[%c0_72, %c0_73] : memref<1x8xf32, #tpu.memory_space<vmem>>, vector<1x8xf32>
    %98 = vector.broadcast %97 : vector<1x8xf32> to vector<2x8xf32>
    %99 = arith.addf %96, %98 : vector<2x8xf32>
    %c0_74 = arith.constant 0 : index
    %c0_75 = arith.constant 0 : index
    %100 = vector.load %arg9[%c0_74, %c0_75] : memref<2x8xf32, #tpu.memory_space<vmem>>, vector<2x8xf32>
    tpu.vector_store %arg9[%c0_74, %c0_75], %99 {strides = array<i32>} : memref<2x8xf32, #tpu.memory_space<vmem>>, vector<2x8xf32>,
    return
  }
}

</mosaic_0001>

<bundles_post_ra>
// kernel: baseline_fc_forward.1
= control target key start
LH: loop header
LB: loop body
LE: loop exit
PB: predicated region body
PF: predicated region fallthrough
CT: control target
= control target key end

     0   :  { %14 = vsyncpa [#allocation5], 0  ;;  %s1946_s0 = inlined_call_operand.vmem [shape: s32[2,8], index: 0, kind: input, shape index: {}]   ;;  %s1947_s1 = inlined_call_operand.vmem [shape: f32[2,32], index: 1, kind: input, shape index: {}]   ;;  %s1948_s2 = inlined_call_operand.vmem [shape: f32[32,128], index: 2, kind: input, shape index: {}]   ;;  %s1949_s3 = inlined_call_operand.hbm [shape: f32[24,8,128], index: 3, kind: input, shape index: {}]   ;;  %s1950_s4 = inlined_call_operand.vmem [shape: f32[1,128], index: 4, kind: input, shape index: {}]   ;;  %s1951_s5 = inlined_call_operand.vmem [shape: f32[128,128], index: 5, kind: input, shape index: {}]   ;;  %s1952_s6 = inlined_call_operand.vmem [shape: f32[1,128], index: 6, kind: input, shape index: {}]   ;;  %s1953_s7 = inlined_call_operand.vmem [shape: f32[128,8], index: 7, kind: input, shape index: {}]   ;;  %s1954_s8 = inlined_call_operand.vmem [shape: f32[1,8], index: 8, kind: input, shape index: {}]   ;;  %s1955_s9 = inlined_call_operand.hbm [shape: f32[2,8], index: 9, kind: output, shape index: {}]  }
   0x1   :  { %15 = vsyncpa [#allocation3], 0 }
   0x2   :  { %16 = vsyncpa [#allocation4], 0  ;;  %s22_s11 = sshll.u32 %s1946_s0, 4  ;;  %s34_s14 = sshll.u32 %s1949_s3, 4  ;;  %s23_s11 = int_to_ptr.vmem [resolvable:$true] %s22_s11  ;;  %s35_s14 = int_to_ptr.hbm [resolvable:$true] %s34_s14 }
   0x3   :  { %s1225_s15 = smov [#allocation2]   ;;  %s1226_s16 = smov [#allocation6]  }
   0x4   :  { %25 = dma.vmem_to_smem %s23_s11, 32, %s1225_s15, [#allocation5]  }
   0x5   :  { %s36_s17 = sshll.u32 %s1226_s16, 4  ;;  %s1227_s18 = smov 128   ;;  %s37_s17 = int_to_ptr.vmem [resolvable:$true] %s36_s17 }
   0x6   :  { %s1228_s19 = smov 8  }
   0x7   :  { %42 = dma.hbm_to_vmem [thread:$0]  %s35_s14, 3072, %s37_s17, [#allocation3], %s1227_s18, %s1227_s18, %s1228_s19  }
   0x8   :  { %1219 = dma.done.wait [#allocation5], 32  }
   0x9   :  { %1220 = vsyncadd [#allocation5], 4294967264 }
   0xa   :  { %1221 = dma.done.wait [#allocation3], 3072  }
   0xb   :  { %1222 = vsyncadd [#allocation3], 4294964224 }
   0xc   :  { %61 = sfence }
   0xd   :  { %v66_v0 = vld [vmem:[%s1948_s2 + $0x18] sm:$0xff]  ;;  %v65_v1 = vld [vmem:[%s1948_s2 + $0x10] sm:$0xff]  ;;  %v64_v2 = vld [vmem:[%s1948_s2 + $0x8] sm:$0xff]  ;;  %vm71_vm0 = vcmask 261120   ;;  %s260_s13 = sld [smem:[#allocation2]]  ;;  %vm343_vm1 = vcmask 1040384  }
   0xe   :  { %v1295_v3 = vand.u32 4294901760, %v66_v0  ;;  %v1297_v4 = vand.u32 4294901760, %v65_v1  ;;  %v1299_v5 = vand.u32 4294901760, %v64_v2  ;;  %v63_v6 = vld [vmem:[%s1948_s2] sm:$0xff]  ;;  %v361_v10 = vld [vmem:[%s1951_s5 + $0x78] sm:$0xff]  ;;  %v360_v11 = vld [vmem:[%s1951_s5 + $0x70] sm:$0xff] }
   0xf   :  { %v62_v7 = vld [vmem:[%s1947_s1] sm:$0x3]  ;;  %v1307_v8 = vand.u32 4294901760, %v63_v6  ;;  %v359_v12 = vld [vmem:[%s1951_s5 + $0x68] sm:$0xff]  ;;  %v1332_v18 = vand.u32 4294901760, %v361_v10  ;;  %v1334_v19 = vand.u32 4294901760, %v360_v11 }
  0x10   :  { %v73_v9 = vsel %vm71_vm0, %v62_v7, 0  ;;  %v117_v13 = vsub.f32 %v66_v0, %v1295_v3  ;;  %88 = vmatpush.msra.mxu0 %v1295_v3  ;;  %v1321_v14 = vsub.f32 %v65_v1, %v1297_v4  ;;  %188 = vmatpush.msra.mxu3 %v1295_v3  ;;  %v1325_v15 = vsub.f32 %v64_v2, %v1299_v5  ;;  %v358_v37 = vld [vmem:[%s1951_s5 + $0x60] sm:$0xff]  ;;  %v357_v38 = vld [vmem:[%s1951_s5 + $0x58] sm:$0xff]  ;;  %v356_v39 = vld [vmem:[%s1951_s5 + $0x50] sm:$0xff]  ;;  %s1137_s2 = sld [smem:[#allocation2 + $0x81]] }
  0x11   :  { %v1327_v16 = vand.u32 4294901760, %v73_v9  ;;  %v1330_v17 = vsub.f32 %v63_v6, %v1307_v8  ;;  %v1336_v20 = vand.u32 4294901760, %v359_v12  ;;  %v1345_v26 = vsub.f32 %v361_v10, %v1332_v18  ;;  %v355_v44 = vld [vmem:[%s1951_s5 + $0x48] sm:$0xff]  ;;  %v354_v49 = vld [vmem:[%s1951_s5 + $0x40] sm:$0xff]  ;;  %v353_v50 = vld [vmem:[%s1951_s5 + $0x38] sm:$0xff]  ;;  %s1121_s14 = sld [smem:[#allocation2 + $0x1]] }
  0x12   :  { %159 = vmatpush.msra.mxu2 %v117_v13  ;;  %90 = vmatpush.msra.mxu0 %v1297_v4  ;;  %v118_v21 = vand.u32 4294901760, %v117_v13  ;;  %v124_v22 = vand.u32 4294901760, %v1321_v14  ;;  %v130_v24 = vand.u32 4294901760, %v1325_v15  ;;  %v1348_v27 = vsub.f32 %v360_v11, %v1334_v19  ;;  %v352_v55 = vld [vmem:[%s1951_s5 + $0x30] sm:$0xff]  ;;  %v351_v56 = vld [vmem:[%s1951_s5 + $0x28] sm:$0xff]  ;;  %s1139_s15 = sld [smem:[#allocation2 + $0x82]] }
  0x13   :  { %v96_v23 = vsub.f32 %v73_v9, %v1327_v16  ;;  %190 = vmatpush.msra.mxu3 %v1297_v4  ;;  %v136_v25 = vand.u32 4294901760, %v1330_v17  ;;  %v1351_v28 = vsub.f32 %v359_v12, %v1336_v20  ;;  %v409_v34 = vand.u32 4294901760, %v1345_v26  ;;  %s1642_s16 = sld [smem:[#allocation2 + $0x2]]  ;;  %s1120_s20 = sshll.u32 %s260_s13, 3 }
  0x14   :  { %162 = vmatpush.msra.mxu2 %v1321_v14  ;;  %v119_v29 = vsub.f32 %v117_v13, %v118_v21  ;;  %92 = vmatpush.msra.mxu0 %v1299_v5  ;;  %v125_v30 = vsub.f32 %v1321_v14, %v124_v22  ;;  %v131_v31 = vsub.f32 %v1325_v15, %v130_v24  ;;  %v415_v35 = vand.u32 4294901760, %v1348_v27  ;;  %s1141_s19 = sld [smem:[#allocation2 + $0x83]]  ;;  %s262_s30 = scalar_lea.vmem [#allocation6], %s1120_s20 }
  0x15   :  { %v97_v32 = vand.u32 4294901760, %v96_v23  ;;  %192 = vmatpush.msra.mxu3 %v1299_v5  ;;  %v137_v33 = vsub.f32 %v1330_v17, %v136_v25  ;;  %v421_v36 = vand.u32 4294901760, %v1351_v28  ;;  %v410_v46 = vsub.f32 %v1345_v26, %v409_v34  ;;  %s1644_s0 = sld [smem:[#allocation2 + $0x3]] }
  0x16   :  { %v120_v40 = vand.u32 4294901760, %v119_v29  ;;  %165 = vmatpush.msra.mxu2 %v1325_v15  ;;  %v126_v41 = vand.u32 4294901760, %v125_v30  ;;  %94 = vmatpush.msra.mxu0 %v1307_v8  ;;  %v132_v42 = vand.u32 4294901760, %v131_v31  ;;  %v416_v47 = vsub.f32 %v1348_v27, %v415_v35  ;;  %v350_v29 = vld [vmem:[%s1951_s5 + $0x20] sm:$0xff]  ;;  %v349_v30 = vld [vmem:[%s1951_s5 + $0x18] sm:$0xff]  ;;  %s1138_s18 = sshll.u32 %s1137_s2, 3 }
  0x17   :  { %v98_v43 = vsub.f32 %v96_v23, %v97_v32  ;;  %194 = vmatpush.msra.mxu3 %v1307_v8  ;;  %v138_v45 = vand.u32 4294901760, %v137_v33  ;;  %v422_v48 = vsub.f32 %v1351_v28, %v421_v36  ;;  %v1397_v52 = vand.u32 4294901760, %v358_v37  ;;  %s1122_s21 = sshll.u32 %s1121_s14, 3  ;;  %s1646_s22 = sld [smem:[#allocation2 + $0x84]] }
  0x18   :  { %217 = vmatpush.msrb.mxu0 %v118_v21  ;;  %121 = vmatpush.msra.mxu1 %v120_v40  ;;  %v1399_v53 = vand.u32 4294901760, %v357_v38  ;;  %v1401_v54 = vand.u32 4294901760, %v356_v39  ;;  %v411_v57 = vand.u32 4294901760, %v410_v46  ;;  %v417_v58 = vand.u32 4294901760, %v416_v47  ;;  %v347_v40 = vld [vmem:[%s1951_s5 + $0x8] sm:$0xff]  ;;  %s1140_s3 = sshll.u32 %s1139_s15, 3 }
  0x19   :  { %168 = vmatpush.msra.mxu2 %v1330_v17  ;;  %v99_v51 = vand.u32 4294901760, %v98_v43  ;;  %198 = vmatmul.f32.vlgmr.msra.gmra.mxu3 %v97_v32  ;;  %v423_v59 = vand.u32 4294901760, %v422_v48  ;;  %v1409_v60 = vand.u32 4294901760, %v355_v44  ;;  %v1412_v61 = vsub.f32 %v358_v37, %v1397_v52  ;;  %s307_s24 = scalar_lea.vmem [#allocation6], %s1138_s18  ;;  %s1124_s25 = sshll.u32 %s1642_s16, 3 }
  0x1a   :  { %171 = vmatmul.f32.vlgmr.msra.gmra.mxu2 %v96_v23  ;;  %127 = vmatpush.msra.mxu1 %v126_v41  ;;  %v1415_v62 = vsub.f32 %v357_v38, %v1399_v53  ;;  %v1418_v63 = vsub.f32 %v356_v39, %v1401_v54  ;;  %v1420_v0 = vand.u32 4294901760, %v354_v49  ;;  %v1425_v2 = vand.u32 4294901760, %v353_v50  ;;  %s1142_s26 = sshll.u32 %s1141_s19, 3  ;;  %s1649_s27 = sld [smem:[#allocation2 + $0x85]] }
  0x1b   :  { %100 = vmatmul.f32.vlgmr.msra.gmra.mxu0 %v99_v51  ;;  %412 = vmatpush.msrb.mxu3 %v411_v57  ;;  %v1423_v1 = vsub.f32 %v355_v44, %v1409_v60  ;;  %v1427_v6 = vand.u32 4294901760, %v352_v55  ;;  %v1429_v7 = vand.u32 4294901760, %v351_v56  ;;  %v427_v9 = vand.u32 4294901760, %v1412_v61  ;;  %s1651_s28 = sld [smem:[#allocation2 + $0x4]]  ;;  %s312_s29 = scalar_lea.vmem [#allocation6], %s1140_s3 }
  0x1c   :  { %221 = vmatpush.msrb.mxu0 %v124_v22  ;;  %133 = vmatpush.msra.mxu1 %v132_v42  ;;  %v433_v10 = vand.u32 4294901760, %v1415_v62  ;;  %v439_v11 = vand.u32 4294901760, %v1418_v63  ;;  %v1436_v12 = vsub.f32 %v354_v49, %v1420_v0  ;;  %v1442_v14 = vsub.f32 %v353_v50, %v1425_v2  ;;  %s267_s10 = scalar_lea.vmem [#allocation6], %s1122_s21  ;;  %s1126_s11 = sshll.u32 %s1644_s0, 3 }
  0x1d   :  { %367 = vmatpush.msrb.mxu2 %v1332_v18  ;;  %418 = vmatpush.msrb.mxu3 %v417_v58  ;;  %v445_v13 = vand.u32 4294901760, %v1423_v1  ;;  %v428_v21 = vsub.f32 %v1412_v61, %v427_v9  ;;  %v1452_v15 = vsub.f32 %v352_v55, %v1427_v6  ;;  %v1469_v17 = vsub.f32 %v351_v56, %v1429_v7  ;;  %s1144_s12 = sshll.u32 %s1646_s22, 3  ;;  %s1655_s1 = sld [smem:[#allocation2 + $0x86]] }
  0x1e   :  { %225 = vmatpush.msrb.mxu0 %v130_v24  ;;  %139 = vmatpush.msra.mxu1 %v138_v45  ;;  %v434_v22 = vsub.f32 %v1415_v62, %v433_v10  ;;  %v440_v23 = vsub.f32 %v1418_v63, %v439_v11  ;;  %v451_v24 = vand.u32 4294901760, %v1436_v12  ;;  %v457_v37 = vand.u32 4294901760, %v1442_v14  ;;  %v346_v45 = vld [vmem:[%s1951_s5] sm:$0xff]  ;;  %s317_s2 = scalar_lea.vmem [#allocation6], %s1142_s26  ;;  %s272_s13 = scalar_lea.vmem [#allocation6], %s1124_s25 }
  0x1f   :  { %369 = vmatpush.msrb.mxu2 %v1334_v19  ;;  %141 = vmatmul.f32.vlgmr.msra.gmra.mxu1 %v1327_v16  ;;  %v429_v31 = vand.u32 4294901760, %v428_v21  ;;  %v446_v33 = vsub.f32 %v1423_v1, %v445_v13  ;;  %v1483_v38 = vand.u32 4294901760, %v350_v29  ;;  %v1485_v39 = vand.u32 4294901760, %v349_v30  ;;  %s1660_s15 = sld [smem:[#allocation2 + $0x87]]  ;;  %s322_s18 = scalar_lea.vmem [#allocation6], %s1144_s12 }
  0x20   :  { %229 = vmatpush.msrb.mxu0 %v136_v25  ;;  %248 = vmatpush.msrb.mxu1 %v1295_v3  ;;  %v348_v25 = vld [vmem:[%s1951_s5 + $0x10] sm:$0xff]  ;;  %v435_v32 = vand.u32 4294901760, %v434_v22  ;;  %v463_v3 = vand.u32 4294901760, %v1452_v15  ;;  %v441_v41 = vand.u32 4294901760, %v440_v23  ;;  %v469_v43 = vand.u32 4294901760, %v1469_v17  ;;  %s1135_s5 = sld [smem:[#allocation2 + $0x80]] }
  0x21   :  { %424 = vmatpush.msrb.mxu3 %v423_v59  ;;  %371 = vmatpush.msrb.mxu2 %v1336_v20  ;;  %v1494_v42 = vand.u32 4294901760, %v348_v25  ;;  %v1499_v44 = vsub.f32 %v350_v29, %v1483_v38  ;;  %v447_v46 = vand.u32 4294901760, %v446_v33  ;;  %v458_v47 = vsub.f32 %v1442_v14, %v457_v37  ;;  %s1146_s14 = sshll.u32 %s1649_s27, 3  ;;  %s1128_s16 = sshll.u32 %s1651_s28, 3 }
  0x22   :  { %510 = vmatpush.msra.mxu0 %v1345_v26  ;;  %250 = vmatpush.msrb.mxu1 %v1297_v4  ;;  %v452_v4 = vsub.f32 %v1436_v12, %v451_v24  ;;  %v1512_v48 = vand.u32 4294901760, %v347_v40  ;;  %v464_v49 = vsub.f32 %v1452_v15, %v463_v3  ;;  %v1524_v56 = vand.u32 4294901760, %v346_v45  ;;  %v313_v26 = vld [vmem:[%s312_s29 + $0x2] sm:$0x1]  ;;  %s277_s19 = scalar_lea.vmem [#allocation6], %s1126_s11  ;;  %s1133_s21 = sld [smem:[#allocation2 + $0x7]] }
  0x23   :  { %231 = vmatmul.f32.vlgmr.msrb.gmra.mxu0 %v1327_v16  ;;  %430 = vmatpush.msrb.mxu3 %v429_v31  ;;  %v475_v51 = vand.u32 4294901760, %v1499_v44  ;;  %v1522_v55 = vsub.f32 %v348_v25, %v1494_v42  ;;  %v470_v57 = vsub.f32 %v1469_v17, %v469_v43  ;;  %s1148_s0 = sshll.u32 %s1655_s1, 3  ;;  %s327_s3 = scalar_lea.vmem [#allocation6], %s1146_s14  ;;  %vm1068_vm2 = vcmask 58368  }
  0x24   :  { %373 = vmatpush.msrb.mxu2 %v1397_v52  ;;  %252 = vmatpush.msrb.mxu1 %v1299_v5  ;;  %v1510_v5 = vsub.f32 %v349_v30, %v1485_v39  ;;  %v453_v50 = vand.u32 4294901760, %v452_v4  ;;  %v1533_v58 = vsub.f32 %v347_v40, %v1512_v48  ;;  %v465_v59 = vand.u32 4294901760, %v464_v49  ;;  %s282_s22 = scalar_lea.vmem [#allocation6], %s1128_s16  ;;  %s332_s25 = scalar_lea.vmem [#allocation6], %s1148_s0 }
  0x25   :  { %513 = vmatpush.msra.mxu0 %v1348_v27  ;;  %436 = vmatpush.msrb.mxu3 %v435_v32  ;;  %v476_v21 = vsub.f32 %v1499_v44, %v475_v51  ;;  %v487_v22 = vand.u32 4294901760, %v1522_v55  ;;  %v1543_v23 = vsub.f32 %v346_v45, %v1524_v56  ;;  %v471_v29 = vand.u32 4294901760, %v470_v57  ;;  %v263_v27 = vld [vmem:[%s262_s30] sm:$0x1] }
  0x26   :  { %375 = vmatpush.msrb.mxu2 %v1399_v53  ;;  %254 = vmatpush.msrb.mxu1 %v1307_v8  ;;  %v459_v8 = vand.u32 4294901760, %v458_v47  ;;  %v493_v31 = vand.u32 4294901760, %v1533_v58  ;;  %s1136_s17 = sshll.u32 %s1135_s5, 3  ;;  %s1657_s5 = sld [smem:[#allocation2 + $0x5]] }
  0x27   :  { %516 = vmatpush.msra.mxu0 %v1351_v28  ;;  %256 = vmatmul.f32.vlgmr.msrb.gmra.mxu1 %v1327_v16  ;;  %v481_v16 = vand.u32 4294901760, %v1510_v5  ;;  %v477_v25 = vand.u32 4294901760, %v476_v21  ;;  %v488_v32 = vsub.f32 %v1522_v55, %v487_v22  ;;  %v499_v33 = vand.u32 4294901760, %v1543_v23  ;;  %s302_s23 = scalar_lea.vmem [#allocation6], %s1136_s17  ;;  %v268_v28 = vld [vmem:[%s267_s10 + $0x1] sm:$0x1] }
  0x28   :  { %442 = vmatpush.msrb.mxu3 %v441_v41  ;;  %377 = vmatpush.msrb.mxu2 %v1401_v54  ;;  %v494_v41 = vsub.f32 %v1533_v58, %v493_v31  ;;  %s1663_s17 = sld [smem:[#allocation2 + $0x6]]  ;;  %s1134_s27 = sshll.u32 %s1133_s21, 3  ;;  %v716_v21 = vld [vmem:[%s1953_s7 + $0x48] sm:$0xff] }
  0x29   :  { %563 = vmatpush.msra.mxu1 %v1332_v18  ;;  %519 = vmatpush.msra.mxu0 %v1412_v61  ;;  %v482_v30 = vsub.f32 %v1510_v5, %v481_v16  ;;  %v489_v4 = vand.u32 4294901760, %v488_v32  ;;  %v500_v45 = vsub.f32 %v1543_v23, %v499_v33  ;;  %v278_v61 = vld [vmem:[%s277_s19 + $0x3] sm:$0x1]  ;;  %s297_s11 = scalar_lea.vmem [#allocation6], %s1134_s27  ;;  %s1077_s19 = sshll.u32 %s1955_s9, 4  ;;  %s1078_s19 = int_to_ptr.hbm [resolvable:$true] %s1077_s19 }
  0x2a   :  { %448 = vmatpush.msrb.mxu3 %v447_v46  ;;  %379 = vmatpush.msrb.mxu2 %v1409_v60  ;;  %v495_v46 = vand.u32 4294901760, %v494_v41 }
  0x2b   :  { %565 = vmatpush.msra.mxu1 %v1334_v19  ;;  %522 = vmatpush.msra.mxu0 %v1415_v62  ;;  %v483_v40 = vand.u32 4294901760, %v482_v30  ;;  %v501_v47 = vand.u32 4294901760, %v500_v45 }
  0x2c   :  { %454 = vmatpush.msrb.mxu3 %v453_v50  ;;  %381 = vmatpush.msrb.mxu2 %v1420_v0  ;;  %s1130_s20 = sshll.u32 %s1657_s5, 3 }
  0x2d   :  { %567 = vmatpush.msra.mxu1 %v1336_v20  ;;  %525 = vmatpush.msra.mxu0 %v1418_v63  ;;  %s287_s26 = scalar_lea.vmem [#allocation6], %s1130_s20 }
  0x2e   :  { %460 = vmatpush.msrb.mxu3 %v459_v8  ;;  %383 = vmatpush.msrb.mxu2 %v1425_v2  ;;  %v717_v8 = vld [vmem:[%s1953_s7 + $0x50] sm:$0xff] }
  0x2f   :  { %569 = vmatpush.msra.mxu1 %v1397_v52  ;;  %528 = vmatpush.msra.mxu0 %v1423_v1  ;;  %v283_v1 = vld [vmem:[%s282_s22 + $0x4] sm:$0x1] }
  0x30   :  { %466 = vmatpush.msrb.mxu3 %v465_v59  ;;  %385 = vmatpush.msrb.mxu2 %v1427_v6  ;;  %v1700_v59 = vand.u32 4294901760, %v717_v8 }
  0x31   :  { %571 = vmatpush.msra.mxu1 %v1399_v53  ;;  %531 = vmatpush.msra.mxu0 %v1436_v12 }
  0x32   :  { %472 = vmatpush.msrb.mxu3 %v471_v29  ;;  %387 = vmatpush.msrb.mxu2 %v1429_v7 }
  0x33   :  { %573 = vmatpush.msra.mxu1 %v1401_v54  ;;  %534 = vmatpush.msra.mxu0 %v1442_v14 }
  0x34   :  { %478 = vmatpush.msrb.mxu3 %v477_v25  ;;  %389 = vmatpush.msrb.mxu2 %v1483_v38 }
  0x35   :  { %575 = vmatpush.msra.mxu1 %v1409_v60  ;;  %537 = vmatpush.msra.mxu0 %v1452_v15 }
  0x36   :  { %484 = vmatpush.msrb.mxu3 %v483_v40  ;;  %391 = vmatpush.msrb.mxu2 %v1485_v39  ;;  %v1724_v40 = vsub.f32 %v717_v8, %v1700_v59 }
  0x37   :  { %577 = vmatpush.msra.mxu1 %v1420_v0  ;;  %540 = vmatpush.msra.mxu0 %v1469_v17 }
  0x38   :  { %490 = vmatpush.msrb.mxu3 %v489_v4  ;;  %393 = vmatpush.msrb.mxu2 %v1494_v42 }
  0x39   :  { %579 = vmatpush.msra.mxu1 %v1425_v2  ;;  %543 = vmatpush.msra.mxu0 %v1499_v44 }
  0x3a   :  { %496 = vmatpush.msrb.mxu3 %v495_v46  ;;  %395 = vmatpush.msrb.mxu2 %v1512_v48 }
  0x3b   :  { %581 = vmatpush.msra.mxu1 %v1427_v6  ;;  %546 = vmatpush.msra.mxu0 %v1510_v5 }
  0x3c   :  { %502 = vmatpush.msrb.mxu3 %v501_v47  ;;  %397 = vmatpush.msrb.mxu2 %v1524_v56 }
  0x3d   :  { %583 = vmatpush.msra.mxu1 %v1429_v7  ;;  %549 = vmatpush.msra.mxu0 %v1522_v55  ;;  %v719_v55 = vld [vmem:[%s1953_s7 + $0x60] sm:$0xff] }
  0x3e   :  { %671 = vmatpush.msra.mxu3 %v1332_v18  ;;  %604 = vmatpush.msra.mxu2 %v409_v34  ;;  %v303_v18 = vld [vmem:[%s302_s23] sm:$0x1]  ;;  %s1150_s23 = sshll.u32 %s1660_s15, 3  ;;  %s1229_s15 = smov [#allocation7]  }
  0x3f   :  { %585 = vmatpush.msra.mxu1 %v1483_v38  ;;  %552 = vmatpush.msra.mxu0 %v1533_v58  ;;  %s337_s28 = scalar_lea.vmem [#allocation6], %s1150_s23  ;;  %s1075_s16 = sshll.u32 %s1229_s15, 4  ;;  %s1076_s16 = int_to_ptr.vmem [resolvable:$true] %s1075_s16 }
  0x40   :  { %673 = vmatpush.msra.mxu3 %v1334_v19  ;;  %608 = vmatpush.msra.mxu2 %v415_v35  ;;  %v308_v19 = vld [vmem:[%s307_s24 + $0x1] sm:$0x1]  ;;  %v269_v35 = vadd.f32 %v268_v28, %v263_v27  ;;  %s1132_s24 = sshll.u32 %s1663_s17, 3  ;;  %v338_v12 = vld [vmem:[%s337_s28 + $0x7] sm:$0x1] }
  0x41   :  { %587 = vmatpush.msra.mxu1 %v1485_v39  ;;  %555 = vmatpush.msra.mxu0 %v1543_v23  ;;  %s292_s10 = scalar_lea.vmem [#allocation6], %s1132_s24 }
  0x42   :  { %675 = vmatpush.msra.mxu3 %v1336_v20  ;;  %612 = vmatpush.msra.mxu2 %v421_v36  ;;  %v309_v20 = vadd.f32 %v308_v19, %v303_v18  ;;  %v318_v36 = vld [vmem:[%s317_s2 + $0x3] sm:$0x1]  ;;  %v293_v14 = vld [vmem:[%s292_s10 + $0x6] sm:$0x1] }
  0x43   :  { %589 = vmatpush.msra.mxu1 %v1494_v42 }
  0x44   :  { %677 = vmatpush.msra.mxu3 %v1397_v52  ;;  %616 = vmatpush.msra.mxu2 %v427_v9  ;;  %v314_v34 = vadd.f32 %v313_v26, %v309_v20  ;;  %v273_v52 = vld [vmem:[%s272_s13 + $0x2] sm:$0x1]  ;;  %v288_v9 = vld [vmem:[%s287_s26 + $0x5] sm:$0x1] }
  0x45   :  { %591 = vmatpush.msra.mxu1 %v1512_v48 }
  0x46   :  { %679 = vmatpush.msra.mxu3 %v1399_v53  ;;  %620 = vmatpush.msra.mxu2 %v433_v10  ;;  %v319_v53 = vadd.f32 %v318_v36, %v314_v34  ;;  %v800_v36 = vand.u32 4294901760, %v1724_v40 }
  0x47   :  { %593 = vmatpush.msra.mxu1 %v1524_v56 }
  0x48   :  { %681 = vmatpush.msra.mxu3 %v1401_v54  ;;  %624 = vmatpush.msra.mxu2 %v439_v11  ;;  %v274_v54 = vadd.f32 %v273_v52, %v269_v35  ;;  %v715_v52 = vld [vmem:[%s1953_s7 + $0x40] sm:$0xff] }
  0x4a   :  { %683 = vmatpush.msra.mxu3 %v1409_v60  ;;  %628 = vmatpush.msra.mxu2 %v445_v13  ;;  %v323_v60 = vld [vmem:[%s322_s18 + $0x4] sm:$0x1]  ;;  %v279_v63 = vadd.f32 %v278_v61, %v274_v54  ;;  %v1156_v13 = vld [vmem:[%s1950_s4] ss:$0 sm:$0xff]  ;;  %v713_v54 = vld [vmem:[%s1953_s7 + $0x30] sm:$0xff] }
  0x4b   :  { %v324_v62 = vadd.f32 %v323_v60, %v319_v53  ;;  %v714_v53 = vld [vmem:[%s1953_s7 + $0x38] sm:$0xff] }
  0x4c   :  { %685 = vmatpush.msra.mxu3 %v1420_v0  ;;  %632 = vmatpush.msra.mxu2 %v451_v24  ;;  %v328_v0 = vld [vmem:[%s327_s3 + $0x5] sm:$0x1] }
  0x4e   :  { %687 = vmatpush.msra.mxu3 %v1425_v2  ;;  %636 = vmatpush.msra.mxu2 %v457_v37  ;;  %v329_v2 = vadd.f32 %v328_v0, %v324_v62  ;;  %v712_v0 = vld [vmem:[%s1953_s7 + $0x28] sm:$0xff] }
  0x50   :  { %689 = vmatpush.msra.mxu3 %v1427_v6  ;;  %640 = vmatpush.msra.mxu2 %v463_v3  ;;  %v284_v6 = vadd.f32 %v283_v1, %v279_v63  ;;  %v298_v3 = vld [vmem:[%s297_s11 + $0x7] sm:$0x1] }
  0x52   :  { %691 = vmatpush.msra.mxu3 %v1429_v7  ;;  %644 = vmatpush.msra.mxu2 %v469_v43  ;;  %v333_v7 = vld [vmem:[%s332_s25 + $0x6] sm:$0x1]  ;;  %v289_v11 = vadd.f32 %v288_v9, %v284_v6  ;;  %v720_v43 = vld [vmem:[%s1953_s7 + $0x68] sm:$0xff] }
  0x53   :  { %v334_v10 = vadd.f32 %v333_v7, %v329_v2  ;;  %v711_v7 = vld [vmem:[%s1953_s7 + $0x20] sm:$0xff] }
  0x54   :  { %693 = vmatpush.msra.mxu3 %v1483_v38  ;;  %648 = vmatpush.msra.mxu2 %v475_v51  ;;  %v294_v17 = vadd.f32 %v293_v14, %v289_v11  ;;  %v1685_v51 = vand.u32 4294901760, %v720_v43  ;;  %v1773_v11 = vand.u32 4294901760, %v714_v53 }
  0x55   :  { %v339_v24 = vadd.f32 %v338_v12, %v334_v10  ;;  %v1770_v10 = vand.u32 4294901760, %v715_v52  ;;  %v1775_v12 = vand.u32 4294901760, %v713_v54 }
  0x56   :  { %695 = vmatpush.msra.mxu3 %v1485_v39  ;;  %652 = vmatpush.msra.mxu2 %v481_v16  ;;  %v722_v39 = vld [vmem:[%s1953_s7 + $0x78] sm:$0xff]  ;;  %v1696_v16 = vand.u32 4294901760, %v719_v55  ;;  %v1712_v30 = vsub.f32 %v720_v43, %v1685_v51 }
  0x57   :  { %v341_v38 = vrot.slane %v339_v24, 7  ;;  %v1681_v49 = vand.u32 4294901760, %v722_v39  ;;  %v1780_v24 = vand.u32 4294901760, %v712_v0 }
  0x58   :  { %697 = vmatpush.msra.mxu3 %v1494_v42  ;;  %656 = vmatpush.msra.mxu2 %v487_v22  ;;  %v721_v42 = vld [vmem:[%s1953_s7 + $0x70] sm:$0xff]  ;;  %v1718_v32 = vsub.f32 %v719_v55, %v1696_v16  ;;  %v782_v46 = vand.u32 4294901760, %v1712_v30 }
  0x59   :  { %v1683_v50 = vand.u32 4294901760, %v721_v42  ;;  %v1706_v23 = vsub.f32 %v722_v39, %v1681_v49  ;;  %728 = vmatpush.msrb.mxu0 %v1681_v49  ;;  %v1795_v39 = vand.u32 4294901760, %v711_v7 }
  0x5a   :  { %699 = vmatpush.msra.mxu3 %v1512_v48  ;;  %660 = vmatpush.msra.mxu2 %v493_v31  ;;  %v299_v48 = vadd.f32 %v298_v3, %v294_v17  ;;  %v1715_v31 = vand.u32 4294901760, %v716_v21  ;;  %v788_v18 = vand.u32 4294901760, %v1718_v32  ;;  %v783_v28 = vsub.f32 %v1712_v30, %v782_v46  ;;  %v710_v17 = vld [vmem:[%s1953_s7 + $0x18] sm:$0xff] }
  0x5b   :  { %v1709_v29 = vsub.f32 %v721_v42, %v1683_v50  ;;  %v770_v4 = vand.u32 4294901760, %v1706_v23  ;;  %730 = vmatpush.msrb.mxu0 %v1683_v50  ;;  %v1789_v3 = vsub.f32 %v714_v53, %v1773_v11  ;;  %v1811_v8 = vand.u32 4294901760, %v710_v17 }
  0x5c   :  { %701 = vmatpush.msra.mxu3 %v1524_v56  ;;  %664 = vmatpush.msra.mxu2 %v499_v33  ;;  %v718_v56 = vld [vmem:[%s1953_s7 + $0x58] sm:$0xff]  ;;  %v1733_v20 = vsub.f32 %v716_v21, %v1715_v31  ;;  %v789_v35 = vsub.f32 %v1718_v32, %v788_v18  ;;  %v344_v61 = vsel %vm343_vm1, %v299_v48, %v341_v38  ;;  %v784_v9 = vand.u32 4294901760, %v783_v28 }
  0x5d   :  { %v1698_v58 = vand.u32 4294901760, %v718_v56  ;;  %v776_v45 = vand.u32 4294901760, %v1709_v29  ;;  %v771_v26 = vsub.f32 %v1706_v23, %v770_v4  ;;  %732 = vmatpush.msrb.mxu0 %v1685_v51  ;;  %v1793_v38 = vsub.f32 %v713_v54, %v1775_v12 }
  0x5e   :  { %v806_v6 = vand.u32 4294901760, %v1733_v20  ;;  %v790_v14 = vand.u32 4294901760, %v789_v35  ;;  %v818_v55 = vand.u32 4294901760, %v1789_v3  ;;  %v1832_v35 = vsub.f32 %v710_v17, %v1811_v8 }
  0x5f   :  { %v1721_v33 = vsub.f32 %v718_v56, %v1698_v58  ;;  %v777_v27 = vsub.f32 %v1709_v29, %v776_v45  ;;  %v772_v62 = vand.u32 4294901760, %v771_v26  ;;  %734 = vmatpush.msrb.mxu0 %v1696_v16  ;;  %v1809_v56 = vsub.f32 %v712_v0, %v1780_v24 }
  0x60   :  { %v819_v28 = vsub.f32 %v1789_v3, %v818_v55 }
  0x61   :  { %v794_v19 = vand.u32 4294901760, %v1721_v33  ;;  %v778_v63 = vand.u32 4294901760, %v777_v27  ;;  %773 = vmatpush.msrb.mxu1 %v772_v62  ;;  %736 = vmatpush.msrb.mxu0 %v1698_v58 }
  0x63   :  { %v795_v2 = vsub.f32 %v1721_v33, %v794_v19  ;;  %779 = vmatpush.msrb.mxu1 %v778_v63  ;;  %738 = vmatpush.msrb.mxu0 %v1700_v59  ;;  %v820_v63 = vand.u32 4294901760, %v819_v28 }
  0x65   :  { %v796_v43 = vand.u32 4294901760, %v795_v2  ;;  %785 = vmatpush.msrb.mxu1 %v784_v9  ;;  %740 = vmatpush.msrb.mxu0 %v1715_v31 }
  0x67   :  { %791 = vmatpush.msrb.mxu1 %v790_v14  ;;  %742 = vmatpush.msrb.mxu0 %v1770_v10 }
  0x69   :  { %797 = vmatpush.msrb.mxu1 %v796_v43  ;;  %744 = vmatpush.msrb.mxu0 %v1773_v11 }
  0x6b   :  { %746 = vmatpush.msrb.mxu0 %v1775_v12 }
  0x6d   :  { %748 = vmatpush.msrb.mxu0 %v1780_v24 }
  0x6f   :  { %750 = vmatpush.msrb.mxu0 %v1795_v39 }
  0x71   :  { %752 = vmatpush.msrb.mxu0 %v1811_v8 }
  0x98   :  { %v101_v15 = vpop.f32.mrf.mxu0 }
  0x99   :  { %v102_v37 = vadd.f32 %v1156_v13, %v101_v15  ;;  %v801_v15 = vsub.f32 %v1724_v40, %v800_v36 }
  0x9b   :  { %v802_v21 = vand.u32 4294901760, %v801_v15 }
  0x9c   :  { %v142_v44 = vpop.f32.mrf.mxu1  ;;  %v199_v22 = vpop.f32.mrf.mxu3 }
  0x9d   :  { %v172_v5 = vpop.f32.mrf.mxu2  ;;  %v143_v57 = vadd.f32 %v142_v44, %v102_v37  ;;  %v1786_v37 = vsub.f32 %v715_v52, %v1770_v10  ;;  %v807_v44 = vsub.f32 %v1733_v20, %v806_v6  ;;  %803 = vmatpush.msrb.mxu1 %v802_v21 }
  0x9f   :  { %v173_v25 = vadd.f32 %v172_v5, %v143_v57  ;;  %v709_v5 = vld [vmem:[%s1953_s7 + $0x10] sm:$0xff]  ;;  %v812_v48 = vand.u32 4294901760, %v1786_v37  ;;  %v808_v27 = vand.u32 4294901760, %v807_v44 }
  0xa0   :  { %v232_v41 = vpop.f32.mrf.mxu0 }
  0xa1   :  { %v200_v47 = vadd.f32 %v199_v22, %v173_v25  ;;  %v813_v22 = vsub.f32 %v1786_v37, %v812_v48  ;;  %v824_v25 = vand.u32 4294901760, %v1793_v38  ;;  %809 = vmatpush.msrb.mxu1 %v808_v27 }
  0xa3   :  { %v233_v34 = vadd.f32 %v232_v41, %v200_v47  ;;  %v1821_v41 = vsub.f32 %v711_v7, %v1795_v39  ;;  %v1823_v47 = vand.u32 4294901760, %v709_v5  ;;  %v814_v53 = vand.u32 4294901760, %v813_v22 }
  0xa4   :  { %v257_v60 = vpop.f32.mrf.mxu1  ;;  %v825_v54 = vsub.f32 %v1793_v38, %v824_v25 }
  0xa5   :  { %v258_v1 = vadd.f32 %v257_v60, %v233_v34  ;;  %v830_v34 = vand.u32 4294901760, %v1809_v56  ;;  %v836_v60 = vand.u32 4294901760, %v1821_v41  ;;  %815 = vmatpush.msrb.mxu1 %v814_v53  ;;  %754 = vmatpush.msrb.mxu0 %v1823_v47 }
  0xa6   :  { %v826_v2 = vand.u32 4294901760, %v825_v54 }
  0xa7   :  { %v345_v13 = vadd.f32 %v344_v61, %v258_v1  ;;  %v1841_v61 = vsub.f32 %v709_v5, %v1823_v47  ;;  %v831_v0 = vsub.f32 %v1809_v56, %v830_v34  ;;  %v842_v1 = vand.u32 4294901760, %v1832_v35  ;;  %821 = vmatpush.msrb.mxu1 %v820_v63 }
  0xa8   :  { %v837_v7 = vsub.f32 %v1821_v41, %v836_v60 }
  0xa9   :  { %v1797_v42 = vand.u32 4294901760, %v345_v13  ;;  %v848_v9 = vand.u32 4294901760, %v1841_v61  ;;  %v843_v14 = vsub.f32 %v1832_v35, %v842_v1  ;;  %827 = vmatpush.msrb.mxu1 %v826_v2 }
  0xaa   :  { %v838_v15 = vand.u32 4294901760, %v837_v7 }
  0xab   :  { %v399_v57 = vsub.f32 %v345_v13, %v1797_v42  ;;  %504 = vmatmul.f32.vlgmr.msrb.gmra.mxu3 %v1797_v42  ;;  %v832_v13 = vand.u32 4294901760, %v831_v0  ;;  %v849_v17 = vsub.f32 %v1841_v61, %v848_v9  ;;  %v844_v43 = vand.u32 4294901760, %v843_v14 }
  0xac   :  { %924 = vmatpush.msrb.mxu3 %v1681_v49 }
  0xad   :  { %558 = vmatmul.f32.vlgmr.msra.gmra.mxu0 %v399_v57  ;;  %v400_v26 = vand.u32 4294901760, %v399_v57  ;;  %833 = vmatpush.msrb.mxu1 %v832_v13  ;;  %v850_v44 = vand.u32 4294901760, %v849_v17 }
  0xae   :  { %926 = vmatpush.msrb.mxu3 %v1683_v50 }
  0xaf   :  { %597 = vmatmul.f32.vlgmr.msra.gmra.mxu1 %v400_v26  ;;  %v401_v52 = vsub.f32 %v399_v57, %v400_v26  ;;  %v707_v57 = vld [vmem:[%s1953_s7] sm:$0xff] }
  0xb0   :  { %928 = vmatpush.msrb.mxu3 %v1685_v51  ;;  %839 = vmatpush.msrb.mxu1 %v838_v15  ;;  %v757_v22 = vand.u32 4294901760, %v707_v57 }
  0xb1   :  { %v402_v62 = vand.u32 4294901760, %v401_v52 }
  0xb2   :  { %930 = vmatpush.msrb.mxu3 %v1696_v16  ;;  %845 = vmatpush.msrb.mxu1 %v844_v43  ;;  %v859_v27 = vsub.f32 %v707_v57, %v757_v22 }
  0xb3   :  { %403 = vmatmul.f32.vlgmr.msrb.gmra.mxu2 %v402_v62  ;;  %703 = vmatmul.f32.vlgmr.msra.gmra.mxu3 %v1797_v42 }
  0xb4   :  { %871 = vmatpush.msrb.mxu2 %v1706_v23  ;;  %932 = vmatpush.msrb.mxu3 %v1698_v58  ;;  %v860_v52 = vand.u32 4294901760, %v859_v27 }
  0xb5   :  { %851 = vmatpush.msrb.mxu1 %v850_v44 }
  0xb6   :  { %874 = vmatpush.msrb.mxu2 %v1709_v29  ;;  %934 = vmatpush.msrb.mxu3 %v1700_v59  ;;  %v861_v54 = vsub.f32 %v859_v27, %v860_v52 }
  0xb8   :  { %877 = vmatpush.msrb.mxu2 %v1712_v30  ;;  %936 = vmatpush.msrb.mxu3 %v1715_v31  ;;  %v862_v62 = vand.u32 4294901760, %v861_v54 }
  0xba   :  { %880 = vmatpush.msrb.mxu2 %v1718_v32  ;;  %938 = vmatpush.msrb.mxu3 %v1770_v10 }
  0xbb   :  { %666 = vmatmul.f32.vlgmr.msra.gmra.mxu2 %v1797_v42  ;;  %v708_v42 = vld [vmem:[%s1953_s7 + $0x8] sm:$0xff] }
  0xbc   :  { %883 = vmatpush.msrb.mxu2 %v1721_v33  ;;  %940 = vmatpush.msrb.mxu3 %v1773_v11  ;;  %v755_v5 = vand.u32 4294901760, %v708_v42 }
  0xbe   :  { %886 = vmatpush.msrb.mxu2 %v1724_v40  ;;  %942 = vmatpush.msrb.mxu3 %v1775_v12  ;;  %v853_v21 = vsub.f32 %v708_v42, %v755_v5 }
  0xbf   :  { %756 = vmatpush.msrb.mxu0 %v755_v5 }
  0xc0   :  { %889 = vmatpush.msrb.mxu2 %v1733_v20  ;;  %944 = vmatpush.msrb.mxu3 %v1780_v24  ;;  %v854_v26 = vand.u32 4294901760, %v853_v21  ;;  %v1158_v20 = vld [vmem:[%s1954_s8] ss:$0 sm:$0xff] }
  0xc1   :  { %758 = vmatpush.msrb.mxu0 %v757_v22 }
  0xc2   :  { %892 = vmatpush.msrb.mxu2 %v1786_v37  ;;  %946 = vmatpush.msrb.mxu3 %v1795_v39  ;;  %v855_v28 = vsub.f32 %v853_v21, %v854_v26 }
  0xc3   :  { %965 = vmatpush.msra.mxu0 %v770_v4 }
  0xc4   :  { %895 = vmatpush.msrb.mxu2 %v1789_v3  ;;  %948 = vmatpush.msrb.mxu3 %v1811_v8  ;;  %v856_v53 = vand.u32 4294901760, %v855_v28 }
  0xc5   :  { %969 = vmatpush.msra.mxu0 %v776_v45 }
  0xc6   :  { %898 = vmatpush.msrb.mxu2 %v1793_v38  ;;  %950 = vmatpush.msrb.mxu3 %v1823_v47 }
  0xc7   :  { %973 = vmatpush.msra.mxu0 %v782_v46  ;;  %857 = vmatpush.msrb.mxu1 %v856_v53 }
  0xc8   :  { %901 = vmatpush.msrb.mxu2 %v1809_v56  ;;  %952 = vmatpush.msrb.mxu3 %v755_v5 }
  0xc9   :  { %977 = vmatpush.msra.mxu0 %v788_v18  ;;  %863 = vmatpush.msrb.mxu1 %v862_v62 }
  0xca   :  { %904 = vmatpush.msrb.mxu2 %v1821_v41  ;;  %954 = vmatpush.msrb.mxu3 %v757_v22 }
  0xcb   :  { %1032 = vmatpush.msra.mxu1 %v1681_v49  ;;  %981 = vmatpush.msra.mxu0 %v794_v19  ;;  %v1157_v49 = vld [vmem:[%s1952_s6] ss:$0 sm:$0xff] }
  0xcc   :  { %907 = vmatpush.msrb.mxu2 %v1832_v35 }
  0xcd   :  { %1034 = vmatpush.msra.mxu1 %v1683_v50  ;;  %985 = vmatpush.msra.mxu0 %v800_v36 }
  0xce   :  { %910 = vmatpush.msrb.mxu2 %v1841_v61 }
  0xcf   :  { %1036 = vmatpush.msra.mxu1 %v1685_v51  ;;  %989 = vmatpush.msra.mxu0 %v806_v6 }
  0xd0   :  { %913 = vmatpush.msrb.mxu2 %v853_v21 }
  0xd1   :  { %1038 = vmatpush.msra.mxu1 %v1696_v16  ;;  %993 = vmatpush.msra.mxu0 %v812_v48 }
  0xd2   :  { %916 = vmatpush.msrb.mxu2 %v859_v27 }
  0xd3   :  { %1040 = vmatpush.msra.mxu1 %v1698_v58  ;;  %997 = vmatpush.msra.mxu0 %v818_v55 }
  0xd5   :  { %1042 = vmatpush.msra.mxu1 %v1700_v59  ;;  %1001 = vmatpush.msra.mxu0 %v824_v25 }
  0xd7   :  { %1044 = vmatpush.msra.mxu1 %v1715_v31  ;;  %1005 = vmatpush.msra.mxu0 %v830_v34 }
  0xd9   :  { %1046 = vmatpush.msra.mxu1 %v1770_v10  ;;  %1009 = vmatpush.msra.mxu0 %v836_v60 }
  0xdb   :  { %1048 = vmatpush.msra.mxu1 %v1773_v11  ;;  %1013 = vmatpush.msra.mxu0 %v842_v1 }
  0xdd   :  { %1050 = vmatpush.msra.mxu1 %v1775_v12  ;;  %1017 = vmatpush.msra.mxu0 %v848_v9 }
  0xdf   :  { %1052 = vmatpush.msra.mxu1 %v1780_v24  ;;  %1021 = vmatpush.msra.mxu0 %v854_v26 }
  0xe1   :  { %1054 = vmatpush.msra.mxu1 %v1795_v39  ;;  %1025 = vmatpush.msra.mxu0 %v860_v52 }
  0xe3   :  { %1056 = vmatpush.msra.mxu1 %v1811_v8 }
  0xe5   :  { %1058 = vmatpush.msra.mxu1 %v1823_v47 }
  0xe7   :  { %1060 = vmatpush.msra.mxu1 %v755_v5 }
  0xe9   :  { %1062 = vmatpush.msra.mxu1 %v757_v22 }
 0x12a   :  { %v559_v59 = vpop.f32.mrf.mxu0 }
 0x12c   :  { %v598_v29 = vpop.f32.mrf.mxu1 }
 0x12e   :  { %v505_v50 = vpop.f32.mrf.mxu3 }
 0x136   :  { %v404_v51 = vpop.f32.mrf.mxu2  ;;  %v704_v33 = vpop.f32.mrf.mxu3 }
 0x137   :  { %v405_v16 = vadd.f32 %v1157_v49, %v404_v51 }
 0x139   :  { %v506_v58 = vadd.f32 %v505_v50, %v405_v16 }
 0x13b   :  { %v560_v23 = vadd.f32 %v559_v59, %v506_v58 }
 0x13d   :  { %v599_v30 = vadd.f32 %v598_v29, %v560_v23 }
 0x13e   :  { %v667_v31 = vpop.f32.mrf.mxu2 }
 0x13f   :  { %v668_v32 = vadd.f32 %v667_v31, %v599_v30 }
 0x141   :  { %v705_v40 = vadd.f32 %v704_v33, %v668_v32 }
 0x143   :  { %v759_v4 = vand.u32 4294901760, %v705_v40 }
 0x145   :  { %v760_v45 = vsub.f32 %v705_v40, %v759_v4  ;;  %865 = vmatmul.f32.vlgmr.msrb.gmra.mxu1 %v759_v4 }
 0x147   :  { %919 = vmatmul.f32.vlgmr.msrb.gmra.mxu2 %v760_v45  ;;  %v761_v46 = vand.u32 4294901760, %v760_v45 }
 0x149   :  { %958 = vmatmul.f32.vlgmr.msrb.gmra.mxu3 %v761_v46  ;;  %v762_v18 = vsub.f32 %v760_v45, %v761_v46 }
 0x14b   :  { %v763_v19 = vand.u32 4294901760, %v762_v18 }
 0x14d   :  { %764 = vmatmul.f32.vlgmr.msrb.gmra.mxu0 %v763_v19  ;;  %1064 = vmatmul.f32.vlgmr.msra.gmra.mxu1 %v759_v4 }
 0x155   :  { %1027 = vmatmul.f32.vlgmr.msra.gmra.mxu0 %v759_v4 }
 0x1c2   :  { %v866_v36 = vpop.f32.mrf.mxu1 }
 0x1ca   :  { %v765_v6 = vpop.f32.mrf.mxu0  ;;  %v920_v12 = vpop.f32.mrf.mxu2 }
 0x1cb   :  { %v766_v10 = vadd.f32 %v1158_v20, %v765_v6  ;;  %v1065_v48 = vpop.f32.mrf.mxu1 }
 0x1cc   :  { %v959_v37 = vpop.f32.mrf.mxu3 }
 0x1cd   :  { %v867_v11 = vadd.f32 %v866_v36, %v766_v10 }
 0x1cf   :  { %v921_v24 = vadd.f32 %v920_v12, %v867_v11 }
 0x1d1   :  { %v960_v3 = vadd.f32 %v959_v37, %v921_v24 }
 0x1d2   :  { %v1028_v38 = vpop.f32.mrf.mxu0 }
 0x1d3   :  { %v1029_v39 = vadd.f32 %v1028_v38, %v960_v3 }
 0x1d5   :  { %v1066_v55 = vadd.f32 %v1065_v48, %v1029_v39 }
 0x1d7   :  { %1069 = vst.msk [vmem:[#allocation7] sm:$0x3] %vm1068_vm2, %v1066_v55 }
 0x1d8   :  { %1080 = dma.vmem_to_hbm [thread:$0]  %s1076_s16, 32, %s1078_s19, [#allocation4]  }
 0x1d9   :  { %1223 = dma.done.wait [#allocation4], 32  }
 0x1da   :  { %1224 = vsyncadd [#allocation4], 4294967264 }
 0x1db   :  { %1085 = vsyncpa [#allocation3], 1 }
 0x1dc   :  { %1086 = vsyncpa [#allocation4], 1 }
 0x1dd   :  { %1087 = vsyncpa [#allocation5], 1 }

</bundles_post_ra>
